<compile_context>
chip_gen: v7x
topology: tpu7x:2x2x1
jax: 0.10.0
libtpu: 0.0.40
codegen_flags: <defaults>
</compile_context>

<pallas_src>
import functools

import jax
import jax.numpy as jnp
from jax import lax
from jax.experimental import pallas as pl
from jax.experimental.pallas import tpu as pltpu


_LANE = 128
# Per pipeline buffer (x is double-buffered). 4 MiB amortizes the fixed
# per-grid-step overhead on all generations while 2x4 MiB + scratch stays far
# below v5e's 16 MiB default scoped limit and v7x's 64 MiB physical VMEM.
_TILE_BYTES_BUDGET = 4 * 1024 * 1024


def _srelu(x, alpha, beta):
    # Faithful translation of the PyTorch SReLU.forward (works in-kernel and in JAX).
    negative_part = alpha * (x - jnp.maximum(-x, 0.0))
    positive_part = jnp.maximum(x, 0.0)
    transition = beta * (x - jnp.maximum(-beta * x, 0.0)) * jax.nn.sigmoid(x)
    return negative_part + positive_part + transition


def _choose_tile(per_split, c, dtype_bytes, budget_bytes):
    """Pick (tile_hw, num_tiles, padded_per_split) from a per-buffer byte budget."""
    target = max(_LANE, budget_bytes // max(1, c * dtype_bytes))
    if per_split <= target:
        # Full extent fits the budget: single tile, no padding.
        return per_split, 1, per_split
    if per_split % _LANE == 0:
        # Largest multiple of 128 that divides per_split and fits the budget.
        t = (target // _LANE) * _LANE
        while t >= _LANE:
            if per_split % t == 0:
                return t, per_split // t, per_split
            t -= _LANE
    # Rare: large H*W not divisible by any 128-multiple <= budget.
    # Zero-pad the tail on the host (sum unaffected; 1/(H*W) uses the true H*W).
    tile = (target // _LANE) * _LANE
    num = -(-per_split // tile)          # cdiv
    return tile, num, num * tile


def _plan_chunks(tile_hw):
    """Split a tile into (acc_lanes, num_chunks, tail_lanes) accumulation chunks."""
    if tile_hw % _LANE == 0:
        for cand in (512, 256, 128):      # 4/2/1 independent 128-lane stripes
            if tile_hw % cand == 0:
                return cand, tile_hw // cand, 0
        return _LANE, tile_hw // _LANE, 0  # unreachable (128 always divides)
    if tile_hw <= 512:
        return tile_hw, 1, 0
    return 512, tile_hw // 512, tile_hw % 512


def _calayer_kernel(x_ref, w1t_ref, b1_ref, w2t_ref, b2_ref, out_ref, acc_ref,
                    *, alpha, beta, num_chunks, acc_lanes, tail_lanes, finalize):
    """
    x_ref   : VMEM (1, C, TILE_HW)  native dtype (f32 / bf16 / f16)
    w1t_ref : VMEM (C, Cr)  f32   conv1 weight, pre-transposed AND pre-scaled by 1/(H*W)
    b1_ref  : VMEM (1, Cr)  f32
    w2t_ref : VMEM (Cr, C)  f32   conv2 weight, pre-transposed (lane-dense in C)
    b2_ref  : VMEM (1, C)   f32
    out_ref : VMEM (1, 1, 1, C) f32  (lane-dense row per (batch, split))
    acc_ref : VMEM (C, acc_lanes) f32 scratch — lane-wise partial sums of x
    """
    h = pl.program_id(2)

    @pl.when(h == 0)
    def _init():
        acc_ref[...] = jnp.zeros_like(acc_ref)

    # Steady state: per-chunk ref loads (no full-tile f32 materialization),
    # pure VPU convert+add into a wide accumulator (independent lane stripes).
    def _chunk_add(k, acc):
        start = pl.multiple_of(k * acc_lanes, acc_lanes)
        chunk = x_ref[0, :, pl.ds(start, acc_lanes)].astype(jnp.float32)
        return acc + chunk

    acc = acc_ref[...]
    if num_chunks == 1:
        acc = acc + x_ref[0, :, :acc_lanes].astype(jnp.float32)
    else:
        acc = lax.fori_loop(0, num_chunks, _chunk_add, acc,
                            unroll=min(4, num_chunks))
    acc_ref[...] = acc
    if tail_lanes:
        tail = x_ref[0, :, pl.ds(num_chunks * acc_lanes, tail_lanes)]
        acc_ref[:, :tail_lanes] += tail.astype(jnp.float32)

    # Epilogue: one cross-lane reduce (as a tiny matmul against ones -> lane-dense
    # row) + the two tiny channel matmuls + SReLU, once per (batch, split).
    @pl.when(h == pl.num_programs(2) - 1)
    def _epilogue():
        acc_f = acc_ref[...]                                     # (C, L)
        ones_row = jnp.ones((1, acc_f.shape[-1]), dtype=jnp.float32)
        pooled = lax.dot_general(                                # (1, C), lane-dense
            ones_row, acc_f, (((1,), (1,)), ((), ())),
            preferred_element_type=jnp.float32)
        if finalize:
            # 1x1 conv #1 (mean scale already folded into w1t), SReLU, 1x1 conv #2.
            y1 = jnp.dot(pooled, w1t_ref[...],
                         preferred_element_type=jnp.float32) + b1_ref[...]   # (1, Cr)
            a = _srelu(y1, alpha, beta)
            y2 = jnp.dot(a, w2t_ref[...],
                         preferred_element_type=jnp.float32) + b2_ref[...]   # (1, C)
            out_ref[0, 0] = y2.astype(out_ref.dtype)
        else:
            # HW-split path: emit raw pooled sums; convs finish in the wrapper.
            out_ref[0, 0] = pooled.astype(out_ref.dtype)


def calayer_forward(x, w1, b1, w2, b2, alpha=0.1, beta=0.8, hw_splits=None):
    """x: [B, C, H, W] (NCHW, any float dtype). w1: [Cr, C], b1: [Cr], w2: [C, Cr], b2: [C]."""
    B, C, H, W = x.shape
    Cr = w1.shape[0]
    HW = H * W
    dtype_bytes = jnp.dtype(x.dtype).itemsize

    # Split the HW axis across a second "parallel" grid axis when batch alone
    # cannot occupy both v7x TensorCores. Harmless (serial) on v5e/v6e.
    if hw_splits is None:
        hw_splits = 2 if (B == 1 and HW % (2 * _LANE) == 0 and HW >= 4 * _LANE) else 1
    n_splits = max(1, int(hw_splits))
    if n_splits > 1 and HW % (n_splits * _LANE) != 0:
        n_splits = 1                      # keep blocks 128-lane aligned without padding

    per_split = HW // n_splits
    tile_hw, tiles_per_split, padded_per_split = _choose_tile(
        per_split, C, dtype_bytes, _TILE_BYTES_BUDGET)
    padded_hw = padded_per_split * n_splits
    acc_lanes, num_chunks, tail_lanes = _plan_chunks(tile_hw)

    x_flat = x.reshape(B, C, HW)
    if padded_hw != HW:                   # rare fallback: zero-pad the ragged tail
        x_flat = jnp.pad(x_flat, ((0, 0), (0, 0), (0, padded_hw - HW)))

    # Tiny parameters in f32; the 1/(H*W) mean scale is folded into w1.
    inv_hw = 1.0 / float(HW)
    w1t = jnp.transpose(w1).astype(jnp.float32) * inv_hw     # (C, Cr)
    b1_row = b1.reshape(1, Cr).astype(jnp.float32)
    w2t = jnp.transpose(w2).astype(jnp.float32)               # (Cr, C)
    b2_row = b2.reshape(1, C).astype(jnp.float32)

    finalize = (n_splits == 1)
    kernel = functools.partial(
        _calayer_kernel,
        alpha=float(alpha), beta=float(beta),
        num_chunks=num_chunks, acc_lanes=acc_lanes,
        tail_lanes=tail_lanes, finalize=finalize)

    # Explicit VMEM budget: 2x double-buffered x tile + f32 accumulator + params.
    tile_bytes = C * tile_hw * dtype_bytes
    acc_bytes = C * acc_lanes * 4
    param_bytes = 4 * (2 * C * Cr + Cr + C)
    out_block_bytes = 4 * C
    footprint = 2 * tile_bytes + acc_bytes + 2 * (param_bytes + out_block_bytes)
    vmem_limit = int(min(56 << 20, max(24 << 20, 2 * footprint + (4 << 20))))

    cost = pl.CostEstimate(
        flops=int(B * C * padded_hw + B * n_splits * 2 * C * acc_lanes + 4 * B * C * Cr),
        transcendentals=int(B * Cr),
        bytes_accessed=int(B * C * padded_hw * dtype_bytes + param_bytes
                           + B * n_splits * C * 4),
    )

    out = pl.pallas_call(
        kernel,
        out_shape=jax.ShapeDtypeStruct((B, n_splits, 1, C), jnp.float32),
        grid=(B, n_splits, tiles_per_split),
        in_specs=[
            pl.BlockSpec((1, C, tile_hw),
                         lambda b, s, h: (b, 0, s * tiles_per_split + h)),  # x, pipelined
            pl.BlockSpec((C, Cr), lambda b, s, h: (0, 0)),                  # w1t (scaled)
            pl.BlockSpec((1, Cr), lambda b, s, h: (0, 0)),                  # b1
            pl.BlockSpec((Cr, C), lambda b, s, h: (0, 0)),                  # w2t
            pl.BlockSpec((1, C), lambda b, s, h: (0, 0)),                   # b2
        ],
        out_specs=pl.BlockSpec((1, 1, 1, C), lambda b, s, h: (b, s, 0, 0)),
        scratch_shapes=[pltpu.VMEM((C, acc_lanes), jnp.float32)],
        compiler_params=pltpu.CompilerParams(
            dimension_semantics=("parallel", "parallel", "arbitrary"),
            vmem_limit_bytes=vmem_limit),
        cost_estimate=cost,
    )(x_flat, w1t, b1_row, w2t, b2_row)

    if finalize:
        return out.reshape(B, C, 1, 1)

    # HW-split path: combine per-split pooled sums, then the (trivially small)
    # conv1 -> SReLU -> conv2 stack on a [B, C] tensor in plain JAX.
    pooled = out.reshape(B, n_splits, C).sum(axis=1)          # (B, C) raw sums (f32)
    y1 = pooled @ w1t + b1_row                                # mean scale folded into w1t
    a = _srelu(y1, alpha, beta)
    y2 = a @ w2t + b2_row
    return y2.reshape(B, C, 1, 1)


def calayer_reference(x, w1, b1, w2, b2, alpha=0.1, beta=0.8):
    """Pure-JAX reference for verification."""
    pooled = jnp.mean(x.astype(jnp.float32), axis=(2, 3))        # [B, C]
    y1 = pooled @ w1.T + b1                                      # [B, Cr]
    a = (alpha * (y1 - jnp.maximum(-y1, 0.0))
         + jnp.maximum(y1, 0.0)
         + beta * (y1 - jnp.maximum(-beta * y1, 0.0)) * jax.nn.sigmoid(y1))
    y2 = a @ w2.T + b2                                           # [B, C]
    return y2.reshape(x.shape[0], x.shape[1], 1, 1)


if __name__ == "__main__":
    key = jax.random.PRNGKey(0)
    kx, kw1, kb1, kw2, kb2, kx2, kx3, kx4 = jax.random.split(key, 8)

    # Small shapes consistent with the module: channel=32, reduction=16 -> hidden=2.
    B, C, H, W = 2, 32, 16, 16
    reduction = 16
    Cr = C // reduction

    x = jax.random.normal(kx, (B, C, H, W), dtype=jnp.float32)
    w1 = 0.1 * jax.random.normal(kw1, (Cr, C), dtype=jnp.float32)
    b1 = 0.1 * jax.random.normal(kb1, (Cr,), dtype=jnp.float32)
    w2 = 0.1 * jax.random.normal(kw2, (C, Cr), dtype=jnp.float32)
    b2 = 0.1 * jax.random.normal(kb2, (C,), dtype=jnp.float32)

    out = jax.block_until_ready(calayer_forward(x, w1, b1, w2, b2))
    ref = calayer_reference(x, w1, b1, w2, b2)
    assert out.shape == (B, C, 1, 1), out.shape
    assert jnp.allclose(out, ref, atol=1e-5, rtol=1e-4), (
        float(jnp.max(jnp.abs(out - ref))))

    # bf16 input with a larger feature map: exercises native-dtype streaming and
    # the multi-chunk fori_loop accumulation path (HW=5120 -> 10 x 512-lane chunks).
    x2 = jax.random.normal(kx2, (B, C, 64, 80), dtype=jnp.bfloat16)
    out2 = jax.block_until_ready(calayer_forward(x2, w1, b1, w2, b2))
    ref2 = calayer_reference(x2, w1, b1, w2, b2)
    assert out2.shape == (B, C, 1, 1), out2.shape
    assert jnp.allclose(out2, ref2, atol=1e-4, rtol=1e-4), (
        float(jnp.max(jnp.abs(out2 - ref2))))

    # B == 1: HW axis auto-splits across a second parallel grid axis
    # (keeps both v7x TensorCores busy); convs finish in the wrapper.
    x3 = jax.random.normal(kx3, (1, C, 32, 32), dtype=jnp.float32)
    out3 = jax.block_until_ready(calayer_forward(x3, w1, b1, w2, b2))
    ref3 = calayer_reference(x3, w1, b1, w2, b2)
    assert out3.shape == (1, C, 1, 1), out3.shape
    assert jnp.allclose(out3, ref3, atol=1e-5, rtol=1e-4), (
        float(jnp.max(jnp.abs(out3 - ref3))))

    # Awkward H*W (225, not a multiple of 128): full-extent single tile, no padding.
    x4 = jax.random.normal(kx4, (B, C, 15, 15), dtype=jnp.float32)
    out4 = jax.block_until_ready(calayer_forward(x4, w1, b1, w2, b2))
    ref4 = calayer_reference(x4, w1, b1, w2, b2)
    assert out4.shape == (B, C, 1, 1), out4.shape
    assert jnp.allclose(out4, ref4, atol=1e-5, rtol=1e-4), (
        float(jnp.max(jnp.abs(out4 - ref4))))

    print("KERNEL_OK")
</pallas_src>

<mosaic_0001>
module attributes {stable_mosaic.version = 11 : i64} {
  func.func @_calayer_kernel(%arg0: i32, %arg1: i32, %arg2: i32, %arg3: memref<1x32x256xf32, #tpu.memory_space<vmem>>, %arg4: memref<32x2xf32, #tpu.memory_space<vmem>>, %arg5: memref<1x2xf32, #tpu.memory_space<vmem>>, %arg6: memref<2x32xf32, #tpu.memory_space<vmem>>, %arg7: memref<1x32xf32, #tpu.memory_space<vmem>>, %arg8: memref<1x1x1x32xf32, #tpu.memory_space<vmem>>, %arg9: memref<32x256xf32, #tpu.memory_space<vmem>>) attributes {dimension_semantics = [#tpu.dimension_semantics<parallel>, #tpu.dimension_semantics<parallel>, #tpu.dimension_semantics<arbitrary>], iteration_bounds = array<i64: 2, 1, 1>, scalar_prefetch = 0 : i64, scratch_operands = 1 : i64, tpu.core_type = #tpu.core_type<tc>, window_params = [{transform_indices = @transform_0, window_bounds = array<i64: 1, 32, 256>}, {pipeline_mode = #tpu.pipeline_mode<synchronous>, transform_indices = @transform_1, window_bounds = array<i64: 32, 2>}, {pipeline_mode = #tpu.pipeline_mode<synchronous>, transform_indices = @transform_2, window_bounds = array<i64: 1, 2>}, {pipeline_mode = #tpu.pipeline_mode<synchronous>, transform_indices = @transform_3, window_bounds = array<i64: 2, 32>}, {pipeline_mode = #tpu.pipeline_mode<synchronous>, transform_indices = @transform_4, window_bounds = array<i64: 1, 32>}, {transform_indices = @transform_5, window_bounds = array<i64: 1, 1, 1, 32>}]} {
    %c0_i32 = arith.constant 0 : i32
    %0 = arith.cmpi eq, %arg2, %c0_i32 : i32
    %1 = arith.extui %0 : i1 to i32
    %c0_i32_0 = arith.constant 0 : i32
    %2 = arith.cmpi ne, %1, %c0_i32_0 : i32
    scf.if %2 {
      %cst = arith.constant 0.000000e+00 : f32
      %11 = vector.broadcast %cst : f32 to vector<32x256xf32>
      %c0_9 = arith.constant 0 : index
      %c0_10 = arith.constant 0 : index
      %12 = vector.load %arg9[%c0_9, %c0_10] : memref<32x256xf32, #tpu.memory_space<vmem>>, vector<32x256xf32>
      tpu.vector_store %arg9[%c0_9, %c0_10], %11 {strides = array<i32>} : memref<32x256xf32, #tpu.memory_space<vmem>>, vector<32x256xf32>,
    } else {
    }
    %c0 = arith.constant 0 : index
    %c0_1 = arith.constant 0 : index
    %3 = vector.load %arg9[%c0, %c0_1] : memref<32x256xf32, #tpu.memory_space<vmem>>, vector<32x256xf32>
    %c0_2 = arith.constant 0 : index
    %c0_3 = arith.constant 0 : index
    %c0_4 = arith.constant 0 : index
    %4 = vector.load %arg3[%c0_2, %c0_3, %c0_4] : memref<1x32x256xf32, #tpu.memory_space<vmem>>, vector<1x32x256xf32>
    %5 = vector.shape_cast %4 : vector<1x32x256xf32> to vector<32x256xf32>
    %6 = arith.addf %3, %5 : vector<32x256xf32>
    %c0_5 = arith.constant 0 : index
    %c0_6 = arith.constant 0 : index
    %7 = vector.load %arg9[%c0_5, %c0_6] : memref<32x256xf32, #tpu.memory_space<vmem>>, vector<32x256xf32>
    tpu.vector_store %arg9[%c0_5, %c0_6], %6 {strides = array<i32>} : memref<32x256xf32, #tpu.memory_space<vmem>>, vector<32x256xf32>,
    %c0_i32_7 = arith.constant 0 : i32
    %8 = arith.cmpi eq, %arg2, %c0_i32_7 : i32
    %9 = arith.extui %8 : i1 to i32
    %c0_i32_8 = arith.constant 0 : i32
    %10 = arith.cmpi ne, %9, %c0_i32_8 : i32
    scf.if %10 {
      %c0_9 = arith.constant 0 : index
      %c0_10 = arith.constant 0 : index
      %11 = vector.load %arg9[%c0_9, %c0_10] : memref<32x256xf32, #tpu.memory_space<vmem>>, vector<32x256xf32>
      %cst = arith.constant 1.000000e+00 : f32
      %12 = vector.broadcast %cst : f32 to vector<1x256xf32>
      %cst_11 = arith.constant dense<0.000000e+00> : vector<1x32xf32>
      %13 = tpu.matmul %12, %11, %cst_11 {dimension_numbers = #tpu.dot_dimension_numbers<[1], [1], [0], [0], [0, 0, 1, 0], [], []>} : vector<1x256xf32>, vector<32x256xf32>, vector<1x32xf32> -> vector<1x32xf32>
      %c0_12 = arith.constant 0 : index
      %c0_13 = arith.constant 0 : index
      %14 = vector.load %arg4[%c0_12, %c0_13] : memref<32x2xf32, #tpu.memory_space<vmem>>, vector<32x2xf32>
      %cst_14 = arith.constant dense<0.000000e+00> : vector<1x2xf32>
      %15 = tpu.matmul %13, %14, %cst_14 {dimension_numbers = #tpu.dot_dimension_numbers<[1], [0], [0], [1], [0, 0, 1, 1], [], []>} : vector<1x32xf32>, vector<32x2xf32>, vector<1x2xf32> -> vector<1x2xf32>
      %c0_15 = arith.constant 0 : index
      %c0_16 = arith.constant 0 : index
      %16 = vector.load %arg5[%c0_15, %c0_16] : memref<1x2xf32, #tpu.memory_space<vmem>>, vector<1x2xf32>
      %17 = arith.addf %15, %16 : vector<1x2xf32>
      %cst_17 = arith.constant 0.000000e+00 : f32
      %18 = vector.broadcast %cst_17 : f32 to vector<1x2xf32>
      %19 = arith.subf %18, %17 : vector<1x2xf32>
      %cst_18 = arith.constant 0.000000e+00 : f32
      %20 = vector.broadcast %cst_18 : f32 to vector<1x2xf32>
      %21 = arith.maximumf %19, %20 : vector<1x2xf32>
      %22 = arith.subf %17, %21 : vector<1x2xf32>
      %cst_19 = arith.constant 1.000000e-01 : f32
      %23 = vector.broadcast %cst_19 : f32 to vector<1x2xf32>
      %24 = arith.mulf %23, %22 : vector<1x2xf32>
      %cst_20 = arith.constant 0.000000e+00 : f32
      %25 = vector.broadcast %cst_20 : f32 to vector<1x2xf32>
      %26 = arith.maximumf %17, %25 : vector<1x2xf32>
      %cst_21 = arith.constant -8.000000e-01 : f32
      %27 = vector.broadcast %cst_21 : f32 to vector<1x2xf32>
      %28 = arith.mulf %27, %17 : vector<1x2xf32>
      %cst_22 = arith.constant 0.000000e+00 : f32
      %29 = vector.broadcast %cst_22 : f32 to vector<1x2xf32>
      %30 = arith.maximumf %28, %29 : vector<1x2xf32>
      %31 = arith.subf %17, %30 : vector<1x2xf32>
      %cst_23 = arith.constant 8.000000e-01 : f32
      %32 = vector.broadcast %cst_23 : f32 to vector<1x2xf32>
      %33 = arith.mulf %32, %31 : vector<1x2xf32>
      %34 = arith.negf %17 : vector<1x2xf32>
      %35 = math.exp %34 : vector<1x2xf32>
      %cst_24 = arith.constant 1.000000e+00 : f32
      %36 = vector.broadcast %cst_24 : f32 to vector<1x2xf32>
      %37 = arith.addf %36, %35 : vector<1x2xf32>
      %38 = arith.divf %36, %37 : vector<1x2xf32>
      %39 = arith.mulf %33, %38 : vector<1x2xf32>
      %40 = arith.addf %24, %26 : vector<1x2xf32>
      %41 = arith.addf %40, %39 : vector<1x2xf32>
      %c0_25 = arith.constant 0 : index
      %c0_26 = arith.constant 0 : index
      %42 = vector.load %arg6[%c0_25, %c0_26] : memref<2x32xf32, #tpu.memory_space<vmem>>, vector<2x32xf32>
      %cst_27 = arith.constant dense<0.000000e+00> : vector<1x32xf32>
      %43 = tpu.matmul %41, %42, %cst_27 {dimension_numbers = #tpu.dot_dimension_numbers<[1], [0], [0], [1], [0, 0, 1, 1], [], []>} : vector<1x2xf32>, vector<2x32xf32>, vector<1x32xf32> -> vector<1x32xf32>
      %c0_28 = arith.constant 0 : index
      %c0_29 = arith.constant 0 : index
      %44 = vector.load %arg7[%c0_28, %c0_29] : memref<1x32xf32, #tpu.memory_space<vmem>>, vector<1x32xf32>
      %45 = arith.addf %43, %44 : vector<1x32xf32>
      %c0_30 = arith.constant 0 : index
      %c0_31 = arith.constant 0 : index
      %c0_32 = arith.constant 0 : index
      %c0_33 = arith.constant 0 : index
      %46 = vector.load %arg8[%c0_30, %c0_31, %c0_32, %c0_33] : memref<1x1x1x32xf32, #tpu.memory_space<vmem>>, vector<1x1x1x32xf32>
      %47 = vector.shape_cast %46 : vector<1x1x1x32xf32> to vector<1x32xf32>
      %48 = vector.shape_cast %45 : vector<1x32xf32> to vector<1x1x1x32xf32>
      tpu.vector_store %arg8[%c0_30, %c0_31, %c0_32, %c0_33], %48 {strides = array<i32>} : memref<1x1x1x32xf32, #tpu.memory_space<vmem>>, vector<1x1x1x32xf32>,
    } else {
    }
    return
  }
  func.func @transform_0(%arg0: i32, %arg1: i32, %arg2: i32) -> (i32, i32, i32) {
    %c1_i32 = arith.constant 1 : i32
    %0 = arith.muli %arg1, %c1_i32 : i32
    %1 = arith.addi %0, %arg2 : i32
    %c0_i32 = arith.constant 0 : i32
    %c0_i32_0 = arith.constant 0 : i32
    return %arg0, %c0_i32, %1 : i32, i32, i32
  }
  func.func @transform_1(%arg0: i32, %arg1: i32, %arg2: i32) -> (i32, i32) {
    %c0_i32 = arith.constant 0 : i32
    %c0_i32_0 = arith.constant 0 : i32
    %c0_i32_1 = arith.constant 0 : i32
    return %c0_i32, %c0_i32_0 : i32, i32
  }
  func.func @transform_2(%arg0: i32, %arg1: i32, %arg2: i32) -> (i32, i32) {
    %c0_i32 = arith.constant 0 : i32
    %c0_i32_0 = arith.constant 0 : i32
    %c0_i32_1 = arith.constant 0 : i32
    return %c0_i32, %c0_i32_0 : i32, i32
  }
  func.func @transform_3(%arg0: i32, %arg1: i32, %arg2: i32) -> (i32, i32) {
    %c0_i32 = arith.constant 0 : i32
    %c0_i32_0 = arith.constant 0 : i32
    %c0_i32_1 = arith.constant 0 : i32
    return %c0_i32, %c0_i32_0 : i32, i32
  }
  func.func @transform_4(%arg0: i32, %arg1: i32, %arg2: i32) -> (i32, i32) {
    %c0_i32 = arith.constant 0 : i32
    %c0_i32_0 = arith.constant 0 : i32
    %c0_i32_1 = arith.constant 0 : i32
    return %c0_i32, %c0_i32_0 : i32, i32
  }
  func.func @transform_5(%arg0: i32, %arg1: i32, %arg2: i32) -> (i32, i32, i32, i32) {
    %c0_i32 = arith.constant 0 : i32
    %c0_i32_0 = arith.constant 0 : i32
    %c0_i32_1 = arith.constant 0 : i32
    return %arg0, %arg1, %c0_i32, %c0_i32_0 : i32, i32, i32, i32
  }
}

</mosaic_0001>

<bundles_post_ra>
// kernel: tpu_custom_call.1
= control target key start
LH: loop header
LB: loop body
LE: loop exit
PB: predicated region body
PF: predicated region fallthrough
CT: control target
= control target key end

     0   :  { %10 = vsyncpa [#allocation4], 0  ;;  %s1145_s0 = inlined_call_operand.hbm [shape: f32[2,32,256], index: 0, kind: input, shape index: {}]   ;;  %s1146_s1 = inlined_call_operand.vmem [shape: f32[32,2], index: 1, kind: input, shape index: {}]   ;;  %s1147_s2 = inlined_call_operand.vmem [shape: f32[1,2], index: 2, kind: input, shape index: {}]   ;;  %s1148_s3 = inlined_call_operand.vmem [shape: f32[2,32], index: 3, kind: input, shape index: {}]   ;;  %s1149_s4 = inlined_call_operand.vmem [shape: f32[1,32], index: 4, kind: input, shape index: {}]   ;;  %s1150_s5 = inlined_call_operand.hbm [shape: f32[2,1,1,32], index: 5, kind: output, shape index: {}]  }
   0x1   :  { %12 = vsyncpa [#allocation4 + $0x1], 0 }
   0x2   :  { %13 = vsyncpa [#allocation5], 0 }
   0x3   :  { %15 = vsyncpa [#allocation5 + $0x1], 0  ;;  %s950_s18 = smov 0   ;;  %s952_s19 = smov 0  }
   0x4   :  { %s954_s20 = smov 0   ;;  %s956_s21 = smov 0  }
   0x5   :  { %s958_s22 = smov 0   ;;  %s960_s23 = smov 0  }
   0x6 LB: > { %s672_s24 = sadd.s32 4294967295, %s910_s23   ;;  %s673_s25 = sadd.s32 4294967294, %s910_s23   ;;  %s910_s23 = sphi %s960_s23, %s21_s23   ;;  %s906_s22 = sphi %s958_s22, %s1165_s22   ;;  %s902_s21 = sphi %s956_s21, %s1164_s21   ;;  %s898_s20 = sphi %s954_s20, %s1163_s20   ;;  %s894_s19 = sphi %s952_s19, %s1162_s19   ;;  %s890_s18 = sphi %s950_s18, %s1161_s18  }
   0x7   : > { %s40_s26 = sadd.s32 1, %s906_s22  ;;  %s51_s27 = sadd.s32 1, %s898_s20 }
   0x8   : > { %p42_p0 = scmp.ge.s32.totalorder %s40_s26, 2  ;;  %p58_p1 = scmp.ne.s32.totalorder %s898_s20, %s894_s19 }
   0x9   : > { %p59_p2 = scmp.eq.s32.totalorder %s910_s23, 0  ;;  %p64_p3 = scmp.ne.s32.totalorder %s894_s19, %s890_s18 }
   0xa   : > { %s1167_s26 = smov (%p42_p0, %s40_s26), 0  ;;  %p65_p5 = scmp.eq.s32.totalorder %s672_s24, 0 }
   0xb   : > { %p991_p4 = por %p59_p2, %p58_p1  ;;  %s46_s29 = ssub.s32 %s906_s22, %s1167_s26 }
   0xc   : > { %p174_p6 = scmp.eq.s32.totalorder %s672_s24, 1  ;;  %p49_p7 = scmp.eq.s32.totalorder %s46_s29, 0 }
   0xd   : > { %p997_p8 = por %p65_p5, %p64_p3  ;;  %p180_p10 = scmp.eq.s32.totalorder %s673_s25, 1 }
   0xe   : > { %p1001_p9 = por %p174_p6, %p58_p1  ;;  %p738_p13 = scmp.lt.s32.totalorder %s910_s23, 2 }
   0xf   : > { %s1006_s7 = scalar_select %p49_p7, %s898_s20, %s51_s27  }
  0x10   : > { %s1154_s6 = scalar_select %p1001_p9, 1, 0 }
  0x11   : > { %p1008_p11 = por %p180_p10, %p64_p3  ;;  %s212_s9 = sand.u32 1, %s898_s20  }
  0x12   : > { %s676_s10 = sshll.u32 %s212_s9, 6  ;;  %s688_s11 = sshll.u32 %s906_s22, 10 }
  0x13   : > { %s1155_s8 = scalar_select %p1008_p11, 1, 0 }
  0x14   : > { %s1019_s14 = scalar_lea.hbm %s1145_s0, %s688_s11  ;;  %s216_s15 = scalar_lea.vmem [#allocation3], %s676_s10 }
  0x15   : > { %s226_s16 = sshll.u32 %s216_s15, 4  ;;  %p1025_p0 = pnand %p738_p13, %p991_p4  ;;  %s1021_s16 = int_to_ptr.vmem [resolvable:$true] %s226_s16 }
  0x16   : > { %s1030_s24 = scalar_lea.sflag [#allocation4], %s212_s9  ;;  %s798_s25 = scalar_lea.hbm %s1019_s14, 1024 }
  0x17   : > { %p799_p2 = scmp.ne.s32.totalorder %s1019_s14, %s798_s25  ;;  %p800_p3 = pneg %p1025_p0 }
  0x18   : > { %s803_s28 = scalar_lea.hbm %s1145_s0, 2048  ;;  %p804_p4 = scmp.lt.u32.totalorder %s1019_s14, %s1145_s0 }
  0x19   : > { %p801_p5 = pnand %p800_p3, %p799_p2  ;;  %p805_p7 = scmp.lt.u32.totalorder %s803_s28, %s798_s25 }
  0x1a   : > { %p807_p13 = scmp.lt.u32.totalorder %s798_s25, %s1019_s14 }
  0x1b   : > { %p802_p6 = pneg %p801_p5  ;;  %p806_p10 = por %p805_p7, %p804_p4 }
  0x1d   : > { %p808_p12 = por %p807_p13, %p806_p10 }
  0x1f   : > { %p809_p1 = pnand %p808_p12, %p802_p6 }
  0x21   : > { %812 = shalt.err (!%p809_p1)
}
  0x22   : > { %s813_s9 = scalar_lea.vmem %s1021_s16, 1024  ;;  %s912_s12 = smov [#allocation3]  }
  0x23   : > { %p814_p2 = scmp.ne.s32.totalorder %s1021_s16, %s813_s9  ;;  %s818_s13 = sshll.u32 %s912_s12, 4  ;;  %s819_s13 = int_to_ptr.vmem [resolvable:$false] %s818_s13 }
  0x24   : > { %s820_s15 = scalar_lea.vmem %s819_s13, 2048  ;;  %p821_p9 = scmp.lt.s32.totalorder %s1021_s16, %s819_s13 }
  0x25   : > { %p816_p5 = pnand %p814_p2, %p800_p3  ;;  %p822_p4 = scmp.lt.s32.totalorder %s820_s15, %s813_s9 }
  0x27   : > { %p817_p11 = pneg %p816_p5  ;;  %p823_p7 = por %p822_p4, %p821_p9 }
  0x29   : > { %p824_p10 = pnand %p823_p7, %p817_p11 }
  0x2b   : > { %827 = shalt.err (!%p824_p10)
}
  0x2c   : > { %s913_s25 = smov 256   ;;  %s914_s27 = smov 16  }
  0x2d   : > { %733 = dma.hbm_to_vmem [thread:$0]  (!%p1025_p0), %s1019_s14, 1024, %s1021_s16, %s1030_s24, %s913_s25, %s913_s25, %s914_s27  }
  0x2e   : > { %p234_p12 = scmp.lt.s32.totalorder %s910_s23, 3  ;;  %p1157_p1 = scmp.ge.s32.totalorder %s910_s23, 1 }
  0x30   : > { %p235_p3 = pnand %p1157_p1, %p234_p12 }
  0x31   : > { %s1062_s29 = sand.u32 (!%p235_p3), 1, %s894_s19  }
  0x32   : > { %238 = sbr.rel (%p235_p3) target bundleno = 761 (0x2f9), region = 40  ;;  %s680_s28 = sshll.u32 (!%p235_p3), %s1062_s29, 6 }
  0x33   : > { %s241_s10 = scalar_lea.sflag (!%p235_p3), [#allocation4], %s1062_s29  ;;  %s244_s11 = scalar_lea.vmem (!%p235_p3), [#allocation3], %s680_s28 }
  0x39   : > { %881 = dma.done.wait (%p997_p8), %s241_s10, 1024  }
  0x3a   : > { %883 = vsyncadd (%p997_p8), %s241_s10, 4294966272  ;;  %v915_v0 = vmov 1.0   ;;  %v916_v1 = vmov 0.0|0.0   ;;  %v293_v2 = vld [vmem:[%s244_s11 + $0x8] sm:$0xff]  ;;  %v295_v3 = vld [vmem:[%s244_s11 + $0x18] sm:$0xff]  ;;  %vm917_vm0 = vmmov 0  }
  0x3b   : > { %391 = vmatprep.mubr.f32.mxu0 %v915_v0  ;;  %720 = vmatprep.subr.bf16.mxu1 %v916_v1  ;;  %v292_v4 = vld [vmem:[%s244_s11] sm:$0xff]  ;;  %v712_v5 = vpack.c.bf16 %v295_v3, %v293_v2  ;;  %v294_v6 = vld [vmem:[%s244_s11 + $0x10] sm:$0xff]  ;;  %v297_v7 = vld [vmem:[%s244_s11 + $0x28] sm:$0xff]  ;;  %v918_v20 = vmov 0.0   ;;  %vm402_vm1 = vcmask 261120   ;;  %vm500_vm2 = vcmask 1041408  }
  0x3c   : > { %v299_v8 = vld [vmem:[%s244_s11 + $0x38] sm:$0xff]  ;;  %v714_v9 = vpack.c.bf16 %v294_v6, %v292_v4  ;;  %v397_v11 = vld [vmem:[%s1146_s1] sm:$0xff]  ;;  %v398_v12 = vld [vmem:[%s1146_s1 + $0x8] sm:$0xff]  ;;  %704 = vmatprep.mubr.msk.f32.mxu1 %vm917_vm0, %v918_v20  ;;  %vm496_vm3 = vcmask 15360   ;;  %s685_s14 = sshll.u32 %s902_s21, 4  ;;  %s269_s16 = scalar_lea.vmem [#allocation6], %s1062_s29 }
  0x3d   : > { %v716_v10 = vpack.c.bf16 %v299_v8, %v297_v7  ;;  %713 = vmatprep.subr.bf16.mxu0 %v712_v5  ;;  %v399_v13 = vld [vmem:[%s1146_s1 + $0x10] sm:$0xff]  ;;  %v400_v14 = vld [vmem:[%s1146_s1 + $0x18] sm:$0xff]  ;;  %v721_v15 = vpack.c.bf16 %v398_v12, %v397_v11  ;;  %v296_v16 = vld [vmem:[%s244_s11 + $0x20] sm:$0xff]  ;;  %s590_s30 = sshll.u32 %s269_s16, 4  ;;  %vm574_vm4 = vcmask 253952   ;;  %s1096_s9 = scalar_lea.hbm %s1150_s5, %s685_s14  ;;  %s1098_s30 = int_to_ptr.vmem [resolvable:$true] %s590_s30 }
  0x3e   : > { %715 = vmatpush1.bf16.xpose.msra.mxu0 %v714_v9  ;;  %v298_v17 = vld [vmem:[%s244_s11 + $0x30] sm:$0xff]  ;;  %v724_v18 = vpack.c.bf16 %v400_v14, %v399_v13  ;;  %v494_v23 = vld [vmem:[%s1148_s3] sm:$0x3]  ;;  %s577_s12 = scalar_lea.sflag [#allocation5], %s1062_s29  ;;  %s828_s13 = scalar_lea.vmem %s1098_s30, 16 }
  0x3f   : > { %717 = vmatprep.subr.bf16.mxu0 %v716_v10  ;;  %722 = vmatpush3.bf16.msra.mxu1 %v721_v15  ;;  %v718_v19 = vpack.c.bf16 %v298_v17, %v296_v16  ;;  %v401_v24 = vld [vmem:[%s1147_s2] sm:$0x1]  ;;  %p829_p8 = scmp.ne.s32.totalorder %s1098_s30, %s828_s13  ;;  %p1158_p9 = scmp.ne.s32.totalorder %s1154_s6, 0 }
  0x40   : > { %723 = vmatprep.subr.bf16.mxu1 %v916_v1  ;;  %v495_v44 = vld [vmem:[%s1149_s4] sm:$0x1]  ;;  %s919_s21 = smov [#allocation6]  }
  0x41   : > { %p830_p11 = pnand %p829_p8, %p1158_p9  ;;  %s832_s15 = sshll.u32 %s919_s21, 4  ;;  %s833_s15 = int_to_ptr.vmem [resolvable:$false] %s832_s15 }
  0x42   : > { %s834_s25 = scalar_lea.vmem %s833_s15, 32  ;;  %p835_p6 = scmp.lt.s32.totalorder %s1098_s30, %s833_s15 }
  0x43   : > { %725 = vmatpush3.bf16.msra.mxu1 %v724_v18  ;;  %p831_p0 = pneg %p830_p11  ;;  %p836_p13 = scmp.lt.s32.totalorder %s834_s25, %s828_s13 }
  0x44   : > { %707 = vmatprep.subr.mxu1 %v918_v20 }
  0x45   : > { %p837_p2 = por %p836_p13, %p835_p6 }
  0x46   : > { %719 = vmatpush1.bf16.xpose.msra.mxu0 %v718_v19 }
  0x47   : > { %p838_p5 = pnand %p837_p2, %p831_p0 }
  0x4d   : > { %392 = vmatmul.mubr.f32.vlgmr.msra.gmra.mrb[0].mxu0 %v915_v0 }
 0x120   : > { %v393_v21 = vpop.f32.mrb[0].mxu0 }
 0x121   : > { %v395_v22 = vpop.f32.mrb[1].mxu0  ;;  %705 = vmatmul.mubr.msk.f32.vlgmr.msra.gmra.mrb[0].mxu1 %vm402_vm1, %v393_v21 }
 0x122   : > { %709 = vmatprep.mubr.msk.f32.mxu1 %vm917_vm0, %v918_v20  ;;  %708 = vmatpush3.msk.msra.mxu1 %vm500_vm2, %v494_v23 }
 0x1f4   : > { %v472_v25 = vpop.f32.mrb[0].mxu1 }
 0x1f5   : > { %v473_v26 = vadd.f32 %v472_v25, %v401_v24  ;;  %v706_v27 = vpop.f32.mrb[1].mxu1 }
 0x1f7   : > { %v682_v28 = vmul.f32 -1.442695, %v473_v26  ;;  %v476_v29 = vsub.f32 0.0, %v473_v26  ;;  %v481_v31 = vmul.f32 -0.8, %v473_v26  ;;  %v480_v38 = vmax.f32 %v473_v26, 0.0 }
 0x1f9   : > { %794 = vpow2.f32 %v682_v28  ;;  %v477_v33 = vmax.f32 %v476_v29, 0.0  ;;  %v482_v34 = vmax.f32 %v481_v31, 0.0 }
 0x1fb   : > { %v478_v35 = vsub.f32 %v473_v26, %v477_v33  ;;  %v483_v36 = vsub.f32 %v473_v26, %v482_v34 }
 0x1fd   : > { %v479_v37 = vmul.f32 0.1, %v478_v35  ;;  %v484_v39 = vmul.f32 0.8, %v483_v36 }
 0x1ff   : > { %v492_v42 = vadd.f32 %v480_v38, %v479_v37 }
 0x203   : > { %v795_v30 = vpop.eup %794 }
 0x204   : > { %v488_v32 = vadd.f32 1.0, %v795_v30 }
 0x206   : > { %796 = vrcp.f32 %v488_v32 }
 0x210   : > { %v797_v40 = vpop.eup %796 }
 0x211   : > { %v491_v41 = vmul.f32 %v797_v40, %v484_v39 }
 0x213   : > { %v493_v43 = vadd.f32 %v492_v42, %v491_v41 }
 0x215   : > { %710 = vmatmul.mubr.msk.f32.vlgmr.msra.gmra.mrb[2].mxu1 %vm496_vm3, %v493_v43 }
 0x2e8   : > { %v570_v45 = vpop.f32.mrb[2].mxu1 }
 0x2e9   : > { %v571_v46 = vadd.f32 %v570_v45, %v495_v44  ;;  %v711_v47 = vpop.f32.mrb[3].mxu1 }
 0x2eb   : > { %575 = vst.msk [vmem:[%s269_s16] sm:$0x1] %vm574_vm4, %v571_v46 }
 0x2ec   : > { %841 = shalt.err (!%p838_p5)
}
 0x2ed   : > { %s842_s29 = scalar_lea.hbm %s1096_s9, 16  ;;  %s846_s10 = scalar_lea.hbm %s1150_s5, 32 }
 0x2ee   : > { %p843_p4 = scmp.ne.s32.totalorder %s1096_s9, %s842_s29  ;;  %p847_p12 = scmp.lt.u32.totalorder %s1096_s9, %s1150_s5 }
 0x2ef   : > { %p848_p1 = scmp.lt.u32.totalorder %s846_s10, %s842_s29  ;;  %p850_p8 = scmp.lt.u32.totalorder %s842_s29, %s1096_s9 }
 0x2f0   : > { %p844_p7 = pnand %p843_p4, %p1158_p9 }
 0x2f1   : > { %p849_p3 = por %p848_p1, %p847_p12 }
 0x2f2   : > { %p845_p10 = pneg %p844_p7 }
 0x2f3   : > { %p851_p11 = por %p850_p8, %p849_p3 }
 0x2f5   : > { %p852_p0 = pnand %p851_p11, %p845_p10 }
 0x2f7   : > { %855 = shalt.err (!%p852_p0)
}
 0x2f8   : > { %728 = dma.vmem_to_hbm [thread:$0]  (%p1158_p9), %s1098_s30, 16, %s1096_s9, %s577_s12  }
 0x2f9 PF: > { %s602_s16 = sand.u32 1, %s890_s18   ;;  %p1159_p6 = scmp.ne.s32.totalorder %s1155_s8, 0 }
 0x2fa   : > { %p1160_p13 = scmp.ge.s32.totalorder %s910_s23, 2  ;;  %s603_s17 = scalar_lea.sflag [#allocation5], %s602_s16 }
 0x2fc   : > { %p735_p2 = pnand %p1160_p13, %p1159_p6 }
 0x2fe   : > { %885 = dma.done.wait (!%p735_p2), %s603_s17, 16  }
 0x2ff   : > { %887 = vsyncadd (!%p735_p2), %s603_s17, 4294967280  ;;  %s21_s23 = sadd.s32 1, %s910_s23   ;;  %s1161_s18 = smov %s894_s19 }
 0x300   : > { %p18_p5 = scmp.ge.s32.totalorder %s21_s23, 4   ;;  %s1162_s19 = smov %s898_s20 }
 0x301   : > { %s1163_s20 = smov %s1006_s7  ;;  %s1164_s21 = smov %s906_s22 }
 0x302   : > { %s1165_s22 = smov %s1167_s26  ;;  %20 = sbr.rel (!%p18_p5) target bundleno = 6 (0x6), region = 93 }
 0x309   :  { %607 = vsyncpa [#allocation4], 1 }
 0x30a   :  { %609 = vsyncpa [#allocation4 + $0x1], 1 }
 0x30b   :  { %610 = vsyncpa [#allocation5], 1 }
 0x30c   :  { %612 = vsyncpa [#allocation5 + $0x1], 1 }

</bundles_post_ra>
